<compile_context>
chip_gen: v5e
topology: v5e:2x2
jax: 0.10.0
libtpu: 0.0.40
codegen_flags: <defaults>
</compile_context>

<pallas_src>
import functools

import jax
import jax.numpy as jnp
from jax.experimental import pallas as pl
from jax.experimental.pallas import tpu as pltpu


# ----------------------------------------------------------------------------
# Fused attention kernel: qkv proj -> per-head softmax attention -> out proj
# ----------------------------------------------------------------------------
def fused_attention_kernel(x_ref, wqkv_ref, wproj_ref, bproj_ref, o_ref,
                           *, num_heads, scale):
    # x_ref:    (1, N, C)   activation tile for one batch element
    # wqkv_ref: (C, 3C)     qkv weight, pre-transposed (x @ W^T)
    # wproj_ref:(C, C)      proj weight, pre-transposed
    # bproj_ref:(1, C)      proj bias
    # o_ref:    (1, N, C)   output tile (lane-dense, C wide)
    N, C = x_ref.shape[1], x_ref.shape[2]
    D = C // num_heads
    dt = x_ref.dtype

    x = x_ref[0]                                                     # (N, C)

    # qkv projection (qkv_bias=False -> no bias add), f32 accumulate on the MXU.
    qkv = jnp.dot(x, wqkv_ref[...], preferred_element_type=jnp.float32)  # (N, 3C)

    # Accumulate the (head-merge + output projection) directly:
    #   out = sum_h  o_h @ W_proj[h*D:(h+1)*D, :]
    # Every partial product is already (N, C) lane-dense; no concat/transpose.
    out_acc = bproj_ref[...].astype(jnp.float32)                     # (1, C) -> bcast

    for h in range(num_heads):                                       # unrolled, static
        # Head split via static column slices of the qkv slab; fold scale into q.
        q = (qkv[:, h * D:(h + 1) * D] * scale).astype(dt)           # (N, D)
        k = qkv[:, C + h * D:C + (h + 1) * D].astype(dt)             # (N, D)
        v = qkv[:, 2 * C + h * D:2 * C + (h + 1) * D].astype(dt)     # (N, D)

        # scores = q k^T (contraction on D for both operands; no explicit .T)
        s = jax.lax.dot_general(q, k, (((1,), (1,)), ((), ())),
                                preferred_element_type=jnp.float32)  # (N, N)
        s = s - jnp.max(s, axis=-1, keepdims=True)
        p = jnp.exp(s)
        p = p * pl.reciprocal(jnp.sum(p, axis=-1, keepdims=True), approx=True)

        o_h = jnp.dot(p.astype(dt), v, preferred_element_type=jnp.float32)  # (N, D)

        # fused head-merge + proj: (N, D) @ (D, C) -> (N, C)
        w_h = wproj_ref[h * D:(h + 1) * D, :]                        # (D, C)
        out_acc = out_acc + jnp.dot(o_h.astype(dt), w_h,
                                    preferred_element_type=jnp.float32)

    o_ref[0] = out_acc.astype(o_ref.dtype)                           # lane-dense store


# ----------------------------------------------------------------------------
# Wrapper
# ----------------------------------------------------------------------------
def attention_forward(x, params, num_heads):
    B, N, C = x.shape
    assert C % num_heads == 0
    D = C // num_heads
    scale = D ** (-0.5)

    kernel = functools.partial(fused_attention_kernel,
                               num_heads=num_heads, scale=scale)

    return pl.pallas_call(
        kernel,
        out_shape=jax.ShapeDtypeStruct((B, N, C), x.dtype),
        grid=(B,),
        in_specs=[
            pl.BlockSpec((1, N, C), lambda b: (b, 0, 0)),     # x: one batch per step
            pl.BlockSpec((C, 3 * C), lambda b: (0, 0)),       # qkv weight (resident)
            pl.BlockSpec((C, C), lambda b: (0, 0)),           # proj weight (resident)
            pl.BlockSpec((1, C), lambda b: (0, 0)),           # proj bias (resident)
        ],
        out_specs=pl.BlockSpec((1, N, C), lambda b: (b, 0, 0)),
        compiler_params=pltpu.CompilerParams(
            dimension_semantics=("parallel",),                # shards B across TCs (v7x)
            vmem_limit_bytes=48 * 1024 * 1024,                # safe on v5e/v6e/v7x
        ),
    )(x, params["w_qkv_t"], params["w_proj_t"], params["b_proj"].reshape(1, C))


def init_params(key, dim):
    """Deterministic init mimicking nn.Linear default (uniform +-1/sqrt(fan_in))."""
    k1, k2, k3 = jax.random.split(key, 3)
    bound = 1.0 / (dim ** 0.5)
    w_qkv = jax.random.uniform(k1, (3 * dim, dim), jnp.float32, -bound, bound)
    w_proj = jax.random.uniform(k2, (dim, dim), jnp.float32, -bound, bound)
    b_proj = jax.random.uniform(k3, (dim,), jnp.float32, -bound, bound)
    return {
        "w_qkv_t": w_qkv.T,                            # (C, 3C), pre-transposed
        "b_qkv": jnp.zeros((3 * dim,), jnp.float32),   # qkv_bias=False (unused in kernel)
        "w_proj_t": w_proj.T,                          # (C, C)
        "b_proj": b_proj,
    }


def reference_forward(x, params, num_heads):
    """Pure-JAX reference mirroring the PyTorch forward."""
    B, N, C = x.shape
    D = C // num_heads
    scale = D ** (-0.5)
    qkv = x.reshape(B * N, C) @ params["w_qkv_t"] + params["b_qkv"]
    qkv = qkv.reshape(B, N, 3, num_heads, D).transpose(2, 0, 3, 1, 4)
    q, k, v = qkv[0], qkv[1], qkv[2]
    attn = jnp.einsum("bhnd,bhmd->bhnm", q, k) * scale
    attn = jax.nn.softmax(attn, axis=-1)
    o = jnp.einsum("bhnm,bhmd->bhnd", attn, v)
    o = o.transpose(0, 2, 1, 3).reshape(B, N, C)
    return (o.reshape(B * N, C) @ params["w_proj_t"] + params["b_proj"]).reshape(B, N, C)


if __name__ == "__main__":
    B, N, C, H = 2, 16, 64, 8   # batch, seq, dim, heads  (head_dim = 8)

    key = jax.random.PRNGKey(0)
    kx, kp = jax.random.split(key)
    x = jax.random.normal(kx, (B, N, C), jnp.float32)
    params = init_params(kp, C)

    out = attention_forward(x, params, H)
    out = jax.block_until_ready(out)

    ref = reference_forward(x, params, H)
    assert out.shape == (B, N, C)
    # Tolerance is loosened slightly because the softmax denominator uses the
    # EUP approximate reciprocal (pl.reciprocal(approx=True), ~1e-4 rel. error).
    assert jnp.allclose(out, ref, atol=5e-3, rtol=5e-3), "mismatch vs reference"

    print("KERNEL_OK")
</pallas_src>

<mosaic_0001>
module attributes {stable_mosaic.version = 11 : i64} {
  func.func @fused_attention_kernel(%arg0: i32, %arg1: memref<1x16x64xf32, #tpu.memory_space<vmem>>, %arg2: memref<64x192xf32, #tpu.memory_space<vmem>>, %arg3: memref<64x64xf32, #tpu.memory_space<vmem>>, %arg4: memref<1x64xf32, #tpu.memory_space<vmem>>, %arg5: memref<1x16x64xf32, #tpu.memory_space<vmem>>) attributes {dimension_semantics = [#tpu.dimension_semantics<parallel>], iteration_bounds = array<i64: 2>, scalar_prefetch = 0 : i64, scratch_operands = 0 : i64, tpu.core_type = #tpu.core_type<tc>, window_params = [{transform_indices = @transform_0, window_bounds = array<i64: 1, 16, 64>}, {pipeline_mode = #tpu.pipeline_mode<synchronous>, transform_indices = @transform_1, window_bounds = array<i64: 64, 192>}, {pipeline_mode = #tpu.pipeline_mode<synchronous>, transform_indices = @transform_2, window_bounds = array<i64: 64, 64>}, {pipeline_mode = #tpu.pipeline_mode<synchronous>, transform_indices = @transform_3, window_bounds = array<i64: 1, 64>}, {transform_indices = @transform_4, window_bounds = array<i64: 1, 16, 64>}]} {
    %c0 = arith.constant 0 : index
    %c0_0 = arith.constant 0 : index
    %c0_1 = arith.constant 0 : index
    %0 = vector.load %arg1[%c0, %c0_0, %c0_1] : memref<1x16x64xf32, #tpu.memory_space<vmem>>, vector<1x16x64xf32>
    %1 = vector.shape_cast %0 : vector<1x16x64xf32> to vector<16x64xf32>
    %c0_2 = arith.constant 0 : index
    %c0_3 = arith.constant 0 : index
    %2 = vector.load %arg2[%c0_2, %c0_3] : memref<64x192xf32, #tpu.memory_space<vmem>>, vector<64x192xf32>
    %cst = arith.constant dense<0.000000e+00> : vector<16x192xf32>
    %3 = tpu.matmul %1, %2, %cst {dimension_numbers = #tpu.dot_dimension_numbers<[1], [0], [0], [1], [0, 0, 1, 1], [], []>} : vector<16x64xf32>, vector<64x192xf32>, vector<16x192xf32> -> vector<16x192xf32>
    %c0_4 = arith.constant 0 : index
    %c0_5 = arith.constant 0 : index
    %4 = vector.load %arg4[%c0_4, %c0_5] : memref<1x64xf32, #tpu.memory_space<vmem>>, vector<1x64xf32>
    %5 = vector.extract_strided_slice %3 {offsets = [0, 0], sizes = [16, 8], strides = [1, 1]} : vector<16x192xf32> to vector<16x8xf32>
    %cst_6 = arith.constant 0.353553385 : f32
    %6 = vector.broadcast %cst_6 : f32 to vector<16x8xf32>
    %7 = arith.mulf %5, %6 : vector<16x8xf32>
    %8 = vector.extract_strided_slice %3 {offsets = [0, 64], sizes = [16, 8], strides = [1, 1]} : vector<16x192xf32> to vector<16x8xf32>
    %9 = vector.extract_strided_slice %3 {offsets = [0, 128], sizes = [16, 8], strides = [1, 1]} : vector<16x192xf32> to vector<16x8xf32>
    %cst_7 = arith.constant dense<0.000000e+00> : vector<16x16xf32>
    %10 = tpu.matmul %7, %8, %cst_7 {dimension_numbers = #tpu.dot_dimension_numbers<[1], [1], [0], [0], [0, 0, 1, 0], [], []>} : vector<16x8xf32>, vector<16x8xf32>, vector<16x16xf32> -> vector<16x16xf32>
    %cst_8 = arith.constant dense<0xFF800000> : vector<16xf32>
    %11 = vector.multi_reduction <maximumf>, %10, %cst_8 [1] : vector<16x16xf32> to vector<16xf32>
    %12 = vector.shape_cast %11 : vector<16xf32> to vector<16x1xf32>
    %13 = vector.broadcast %12 : vector<16x1xf32> to vector<16x16xf32>
    %14 = arith.subf %10, %13 : vector<16x16xf32>
    %15 = math.exp %14 : vector<16x16xf32>
    %cst_9 = arith.constant dense<0.000000e+00> : vector<16xf32>
    %16 = vector.multi_reduction <add>, %15, %cst_9 [1] : vector<16x16xf32> to vector<16xf32>
    %17 = vector.shape_cast %16 : vector<16xf32> to vector<16x1xf32>
    %18 = tpu.reciprocal %17 {approx = true} : vector<16x1xf32> -> vector<16x1xf32>
    %19 = vector.broadcast %18 : vector<16x1xf32> to vector<16x16xf32>
    %20 = arith.mulf %15, %19 : vector<16x16xf32>
    %cst_10 = arith.constant dense<0.000000e+00> : vector<16x8xf32>
    %21 = tpu.matmul %20, %9, %cst_10 {dimension_numbers = #tpu.dot_dimension_numbers<[1], [0], [0], [1], [0, 0, 1, 1], [], []>} : vector<16x16xf32>, vector<16x8xf32>, vector<16x8xf32> -> vector<16x8xf32>
    %c0_11 = arith.constant 0 : index
    %c0_12 = arith.constant 0 : index
    %22 = vector.load %arg3[%c0_11, %c0_12] : memref<64x64xf32, #tpu.memory_space<vmem>>, vector<8x64xf32>
    %cst_13 = arith.constant dense<0.000000e+00> : vector<16x64xf32>
    %23 = tpu.matmul %21, %22, %cst_13 {dimension_numbers = #tpu.dot_dimension_numbers<[1], [0], [0], [1], [0, 0, 1, 1], [], []>} : vector<16x8xf32>, vector<8x64xf32>, vector<16x64xf32> -> vector<16x64xf32>
    %24 = vector.broadcast %4 : vector<1x64xf32> to vector<16x64xf32>
    %25 = arith.addf %24, %23 : vector<16x64xf32>
    %26 = vector.extract_strided_slice %3 {offsets = [0, 8], sizes = [16, 8], strides = [1, 1]} : vector<16x192xf32> to vector<16x8xf32>
    %cst_14 = arith.constant 0.353553385 : f32
    %27 = vector.broadcast %cst_14 : f32 to vector<16x8xf32>
    %28 = arith.mulf %26, %27 : vector<16x8xf32>
    %29 = vector.extract_strided_slice %3 {offsets = [0, 72], sizes = [16, 8], strides = [1, 1]} : vector<16x192xf32> to vector<16x8xf32>
    %30 = vector.extract_strided_slice %3 {offsets = [0, 136], sizes = [16, 8], strides = [1, 1]} : vector<16x192xf32> to vector<16x8xf32>
    %cst_15 = arith.constant dense<0.000000e+00> : vector<16x16xf32>
    %31 = tpu.matmul %28, %29, %cst_15 {dimension_numbers = #tpu.dot_dimension_numbers<[1], [1], [0], [0], [0, 0, 1, 0], [], []>} : vector<16x8xf32>, vector<16x8xf32>, vector<16x16xf32> -> vector<16x16xf32>
    %cst_16 = arith.constant dense<0xFF800000> : vector<16xf32>
    %32 = vector.multi_reduction <maximumf>, %31, %cst_16 [1] : vector<16x16xf32> to vector<16xf32>
    %33 = vector.shape_cast %32 : vector<16xf32> to vector<16x1xf32>
    %34 = vector.broadcast %33 : vector<16x1xf32> to vector<16x16xf32>
    %35 = arith.subf %31, %34 : vector<16x16xf32>
    %36 = math.exp %35 : vector<16x16xf32>
    %cst_17 = arith.constant dense<0.000000e+00> : vector<16xf32>
    %37 = vector.multi_reduction <add>, %36, %cst_17 [1] : vector<16x16xf32> to vector<16xf32>
    %38 = vector.shape_cast %37 : vector<16xf32> to vector<16x1xf32>
    %39 = tpu.reciprocal %38 {approx = true} : vector<16x1xf32> -> vector<16x1xf32>
    %40 = vector.broadcast %39 : vector<16x1xf32> to vector<16x16xf32>
    %41 = arith.mulf %36, %40 : vector<16x16xf32>
    %cst_18 = arith.constant dense<0.000000e+00> : vector<16x8xf32>
    %42 = tpu.matmul %41, %30, %cst_18 {dimension_numbers = #tpu.dot_dimension_numbers<[1], [0], [0], [1], [0, 0, 1, 1], [], []>} : vector<16x16xf32>, vector<16x8xf32>, vector<16x8xf32> -> vector<16x8xf32>
    %c8 = arith.constant 8 : index
    %c0_19 = arith.constant 0 : index
    %43 = vector.load %arg3[%c8, %c0_19] : memref<64x64xf32, #tpu.memory_space<vmem>>, vector<8x64xf32>
    %cst_20 = arith.constant dense<0.000000e+00> : vector<16x64xf32>
    %44 = tpu.matmul %42, %43, %cst_20 {dimension_numbers = #tpu.dot_dimension_numbers<[1], [0], [0], [1], [0, 0, 1, 1], [], []>} : vector<16x8xf32>, vector<8x64xf32>, vector<16x64xf32> -> vector<16x64xf32>
    %45 = arith.addf %25, %44 : vector<16x64xf32>
    %46 = vector.extract_strided_slice %3 {offsets = [0, 16], sizes = [16, 8], strides = [1, 1]} : vector<16x192xf32> to vector<16x8xf32>
    %cst_21 = arith.constant 0.353553385 : f32
    %47 = vector.broadcast %cst_21 : f32 to vector<16x8xf32>
    %48 = arith.mulf %46, %47 : vector<16x8xf32>
    %49 = vector.extract_strided_slice %3 {offsets = [0, 80], sizes = [16, 8], strides = [1, 1]} : vector<16x192xf32> to vector<16x8xf32>
    %50 = vector.extract_strided_slice %3 {offsets = [0, 144], sizes = [16, 8], strides = [1, 1]} : vector<16x192xf32> to vector<16x8xf32>
    %cst_22 = arith.constant dense<0.000000e+00> : vector<16x16xf32>
    %51 = tpu.matmul %48, %49, %cst_22 {dimension_numbers = #tpu.dot_dimension_numbers<[1], [1], [0], [0], [0, 0, 1, 0], [], []>} : vector<16x8xf32>, vector<16x8xf32>, vector<16x16xf32> -> vector<16x16xf32>
    %cst_23 = arith.constant dense<0xFF800000> : vector<16xf32>
    %52 = vector.multi_reduction <maximumf>, %51, %cst_23 [1] : vector<16x16xf32> to vector<16xf32>
    %53 = vector.shape_cast %52 : vector<16xf32> to vector<16x1xf32>
    %54 = vector.broadcast %53 : vector<16x1xf32> to vector<16x16xf32>
    %55 = arith.subf %51, %54 : vector<16x16xf32>
    %56 = math.exp %55 : vector<16x16xf32>
    %cst_24 = arith.constant dense<0.000000e+00> : vector<16xf32>
    %57 = vector.multi_reduction <add>, %56, %cst_24 [1] : vector<16x16xf32> to vector<16xf32>
    %58 = vector.shape_cast %57 : vector<16xf32> to vector<16x1xf32>
    %59 = tpu.reciprocal %58 {approx = true} : vector<16x1xf32> -> vector<16x1xf32>
    %60 = vector.broadcast %59 : vector<16x1xf32> to vector<16x16xf32>
    %61 = arith.mulf %56, %60 : vector<16x16xf32>
    %cst_25 = arith.constant dense<0.000000e+00> : vector<16x8xf32>
    %62 = tpu.matmul %61, %50, %cst_25 {dimension_numbers = #tpu.dot_dimension_numbers<[1], [0], [0], [1], [0, 0, 1, 1], [], []>} : vector<16x16xf32>, vector<16x8xf32>, vector<16x8xf32> -> vector<16x8xf32>
    %c16 = arith.constant 16 : index
    %c0_26 = arith.constant 0 : index
    %63 = vector.load %arg3[%c16, %c0_26] : memref<64x64xf32, #tpu.memory_space<vmem>>, vector<8x64xf32>
    %cst_27 = arith.constant dense<0.000000e+00> : vector<16x64xf32>
    %64 = tpu.matmul %62, %63, %cst_27 {dimension_numbers = #tpu.dot_dimension_numbers<[1], [0], [0], [1], [0, 0, 1, 1], [], []>} : vector<16x8xf32>, vector<8x64xf32>, vector<16x64xf32> -> vector<16x64xf32>
    %65 = arith.addf %45, %64 : vector<16x64xf32>
    %66 = vector.extract_strided_slice %3 {offsets = [0, 24], sizes = [16, 8], strides = [1, 1]} : vector<16x192xf32> to vector<16x8xf32>
    %cst_28 = arith.constant 0.353553385 : f32
    %67 = vector.broadcast %cst_28 : f32 to vector<16x8xf32>
    %68 = arith.mulf %66, %67 : vector<16x8xf32>
    %69 = vector.extract_strided_slice %3 {offsets = [0, 88], sizes = [16, 8], strides = [1, 1]} : vector<16x192xf32> to vector<16x8xf32>
    %70 = vector.extract_strided_slice %3 {offsets = [0, 152], sizes = [16, 8], strides = [1, 1]} : vector<16x192xf32> to vector<16x8xf32>
    %cst_29 = arith.constant dense<0.000000e+00> : vector<16x16xf32>
    %71 = tpu.matmul %68, %69, %cst_29 {dimension_numbers = #tpu.dot_dimension_numbers<[1], [1], [0], [0], [0, 0, 1, 0], [], []>} : vector<16x8xf32>, vector<16x8xf32>, vector<16x16xf32> -> vector<16x16xf32>
    %cst_30 = arith.constant dense<0xFF800000> : vector<16xf32>
    %72 = vector.multi_reduction <maximumf>, %71, %cst_30 [1] : vector<16x16xf32> to vector<16xf32>
    %73 = vector.shape_cast %72 : vector<16xf32> to vector<16x1xf32>
    %74 = vector.broadcast %73 : vector<16x1xf32> to vector<16x16xf32>
    %75 = arith.subf %71, %74 : vector<16x16xf32>
    %76 = math.exp %75 : vector<16x16xf32>
    %cst_31 = arith.constant dense<0.000000e+00> : vector<16xf32>
    %77 = vector.multi_reduction <add>, %76, %cst_31 [1] : vector<16x16xf32> to vector<16xf32>
    %78 = vector.shape_cast %77 : vector<16xf32> to vector<16x1xf32>
    %79 = tpu.reciprocal %78 {approx = true} : vector<16x1xf32> -> vector<16x1xf32>
    %80 = vector.broadcast %79 : vector<16x1xf32> to vector<16x16xf32>
    %81 = arith.mulf %76, %80 : vector<16x16xf32>
    %cst_32 = arith.constant dense<0.000000e+00> : vector<16x8xf32>
    %82 = tpu.matmul %81, %70, %cst_32 {dimension_numbers = #tpu.dot_dimension_numbers<[1], [0], [0], [1], [0, 0, 1, 1], [], []>} : vector<16x16xf32>, vector<16x8xf32>, vector<16x8xf32> -> vector<16x8xf32>
    %c24 = arith.constant 24 : index
    %c0_33 = arith.constant 0 : index
    %83 = vector.load %arg3[%c24, %c0_33] : memref<64x64xf32, #tpu.memory_space<vmem>>, vector<8x64xf32>
    %cst_34 = arith.constant dense<0.000000e+00> : vector<16x64xf32>
    %84 = tpu.matmul %82, %83, %cst_34 {dimension_numbers = #tpu.dot_dimension_numbers<[1], [0], [0], [1], [0, 0, 1, 1], [], []>} : vector<16x8xf32>, vector<8x64xf32>, vector<16x64xf32> -> vector<16x64xf32>
    %85 = arith.addf %65, %84 : vector<16x64xf32>
    %86 = vector.extract_strided_slice %3 {offsets = [0, 32], sizes = [16, 8], strides = [1, 1]} : vector<16x192xf32> to vector<16x8xf32>
    %cst_35 = arith.constant 0.353553385 : f32
    %87 = vector.broadcast %cst_35 : f32 to vector<16x8xf32>
    %88 = arith.mulf %86, %87 : vector<16x8xf32>
    %89 = vector.extract_strided_slice %3 {offsets = [0, 96], sizes = [16, 8], strides = [1, 1]} : vector<16x192xf32> to vector<16x8xf32>
    %90 = vector.extract_strided_slice %3 {offsets = [0, 160], sizes = [16, 8], strides = [1, 1]} : vector<16x192xf32> to vector<16x8xf32>
    %cst_36 = arith.constant dense<0.000000e+00> : vector<16x16xf32>
    %91 = tpu.matmul %88, %89, %cst_36 {dimension_numbers = #tpu.dot_dimension_numbers<[1], [1], [0], [0], [0, 0, 1, 0], [], []>} : vector<16x8xf32>, vector<16x8xf32>, vector<16x16xf32> -> vector<16x16xf32>
    %cst_37 = arith.constant dense<0xFF800000> : vector<16xf32>
    %92 = vector.multi_reduction <maximumf>, %91, %cst_37 [1] : vector<16x16xf32> to vector<16xf32>
    %93 = vector.shape_cast %92 : vector<16xf32> to vector<16x1xf32>
    %94 = vector.broadcast %93 : vector<16x1xf32> to vector<16x16xf32>
    %95 = arith.subf %91, %94 : vector<16x16xf32>
    %96 = math.exp %95 : vector<16x16xf32>
    %cst_38 = arith.constant dense<0.000000e+00> : vector<16xf32>
    %97 = vector.multi_reduction <add>, %96, %cst_38 [1] : vector<16x16xf32> to vector<16xf32>
    %98 = vector.shape_cast %97 : vector<16xf32> to vector<16x1xf32>
    %99 = tpu.reciprocal %98 {approx = true} : vector<16x1xf32> -> vector<16x1xf32>
    %100 = vector.broadcast %99 : vector<16x1xf32> to vector<16x16xf32>
    %101 = arith.mulf %96, %100 : vector<16x16xf32>
    %cst_39 = arith.constant dense<0.000000e+00> : vector<16x8xf32>
    %102 = tpu.matmul %101, %90, %cst_39 {dimension_numbers = #tpu.dot_dimension_numbers<[1], [0], [0], [1], [0, 0, 1, 1], [], []>} : vector<16x16xf32>, vector<16x8xf32>, vector<16x8xf32> -> vector<16x8xf32>
    %c32 = arith.constant 32 : index
    %c0_40 = arith.constant 0 : index
    %103 = vector.load %arg3[%c32, %c0_40] : memref<64x64xf32, #tpu.memory_space<vmem>>, vector<8x64xf32>
    %cst_41 = arith.constant dense<0.000000e+00> : vector<16x64xf32>
    %104 = tpu.matmul %102, %103, %cst_41 {dimension_numbers = #tpu.dot_dimension_numbers<[1], [0], [0], [1], [0, 0, 1, 1], [], []>} : vector<16x8xf32>, vector<8x64xf32>, vector<16x64xf32> -> vector<16x64xf32>
    %105 = arith.addf %85, %104 : vector<16x64xf32>
    %106 = vector.extract_strided_slice %3 {offsets = [0, 40], sizes = [16, 8], strides = [1, 1]} : vector<16x192xf32> to vector<16x8xf32>
    %cst_42 = arith.constant 0.353553385 : f32
    %107 = vector.broadcast %cst_42 : f32 to vector<16x8xf32>
    %108 = arith.mulf %106, %107 : vector<16x8xf32>
    %109 = vector.extract_strided_slice %3 {offsets = [0, 104], sizes = [16, 8], strides = [1, 1]} : vector<16x192xf32> to vector<16x8xf32>
    %110 = vector.extract_strided_slice %3 {offsets = [0, 168], sizes = [16, 8], strides = [1, 1]} : vector<16x192xf32> to vector<16x8xf32>
    %cst_43 = arith.constant dense<0.000000e+00> : vector<16x16xf32>
    %111 = tpu.matmul %108, %109, %cst_43 {dimension_numbers = #tpu.dot_dimension_numbers<[1], [1], [0], [0], [0, 0, 1, 0], [], []>} : vector<16x8xf32>, vector<16x8xf32>, vector<16x16xf32> -> vector<16x16xf32>
    %cst_44 = arith.constant dense<0xFF800000> : vector<16xf32>
    %112 = vector.multi_reduction <maximumf>, %111, %cst_44 [1] : vector<16x16xf32> to vector<16xf32>
    %113 = vector.shape_cast %112 : vector<16xf32> to vector<16x1xf32>
    %114 = vector.broadcast %113 : vector<16x1xf32> to vector<16x16xf32>
    %115 = arith.subf %111, %114 : vector<16x16xf32>
    %116 = math.exp %115 : vector<16x16xf32>
    %cst_45 = arith.constant dense<0.000000e+00> : vector<16xf32>
    %117 = vector.multi_reduction <add>, %116, %cst_45 [1] : vector<16x16xf32> to vector<16xf32>
    %118 = vector.shape_cast %117 : vector<16xf32> to vector<16x1xf32>
    %119 = tpu.reciprocal %118 {approx = true} : vector<16x1xf32> -> vector<16x1xf32>
    %120 = vector.broadcast %119 : vector<16x1xf32> to vector<16x16xf32>
    %121 = arith.mulf %116, %120 : vector<16x16xf32>
    %cst_46 = arith.constant dense<0.000000e+00> : vector<16x8xf32>
    %122 = tpu.matmul %121, %110, %cst_46 {dimension_numbers = #tpu.dot_dimension_numbers<[1], [0], [0], [1], [0, 0, 1, 1], [], []>} : vector<16x16xf32>, vector<16x8xf32>, vector<16x8xf32> -> vector<16x8xf32>
    %c40 = arith.constant 40 : index
    %c0_47 = arith.constant 0 : index
    %123 = vector.load %arg3[%c40, %c0_47] : memref<64x64xf32, #tpu.memory_space<vmem>>, vector<8x64xf32>
    %cst_48 = arith.constant dense<0.000000e+00> : vector<16x64xf32>
    %124 = tpu.matmul %122, %123, %cst_48 {dimension_numbers = #tpu.dot_dimension_numbers<[1], [0], [0], [1], [0, 0, 1, 1], [], []>} : vector<16x8xf32>, vector<8x64xf32>, vector<16x64xf32> -> vector<16x64xf32>
    %125 = arith.addf %105, %124 : vector<16x64xf32>
    %126 = vector.extract_strided_slice %3 {offsets = [0, 48], sizes = [16, 8], strides = [1, 1]} : vector<16x192xf32> to vector<16x8xf32>
    %cst_49 = arith.constant 0.353553385 : f32
    %127 = vector.broadcast %cst_49 : f32 to vector<16x8xf32>
    %128 = arith.mulf %126, %127 : vector<16x8xf32>
    %129 = vector.extract_strided_slice %3 {offsets = [0, 112], sizes = [16, 8], strides = [1, 1]} : vector<16x192xf32> to vector<16x8xf32>
    %130 = vector.extract_strided_slice %3 {offsets = [0, 176], sizes = [16, 8], strides = [1, 1]} : vector<16x192xf32> to vector<16x8xf32>
    %cst_50 = arith.constant dense<0.000000e+00> : vector<16x16xf32>
    %131 = tpu.matmul %128, %129, %cst_50 {dimension_numbers = #tpu.dot_dimension_numbers<[1], [1], [0], [0], [0, 0, 1, 0], [], []>} : vector<16x8xf32>, vector<16x8xf32>, vector<16x16xf32> -> vector<16x16xf32>
    %cst_51 = arith.constant dense<0xFF800000> : vector<16xf32>
    %132 = vector.multi_reduction <maximumf>, %131, %cst_51 [1] : vector<16x16xf32> to vector<16xf32>
    %133 = vector.shape_cast %132 : vector<16xf32> to vector<16x1xf32>
    %134 = vector.broadcast %133 : vector<16x1xf32> to vector<16x16xf32>
    %135 = arith.subf %131, %134 : vector<16x16xf32>
    %136 = math.exp %135 : vector<16x16xf32>
    %cst_52 = arith.constant dense<0.000000e+00> : vector<16xf32>
    %137 = vector.multi_reduction <add>, %136, %cst_52 [1] : vector<16x16xf32> to vector<16xf32>
    %138 = vector.shape_cast %137 : vector<16xf32> to vector<16x1xf32>
    %139 = tpu.reciprocal %138 {approx = true} : vector<16x1xf32> -> vector<16x1xf32>
    %140 = vector.broadcast %139 : vector<16x1xf32> to vector<16x16xf32>
    %141 = arith.mulf %136, %140 : vector<16x16xf32>
    %cst_53 = arith.constant dense<0.000000e+00> : vector<16x8xf32>
    %142 = tpu.matmul %141, %130, %cst_53 {dimension_numbers = #tpu.dot_dimension_numbers<[1], [0], [0], [1], [0, 0, 1, 1], [], []>} : vector<16x16xf32>, vector<16x8xf32>, vector<16x8xf32> -> vector<16x8xf32>
    %c48 = arith.constant 48 : index
    %c0_54 = arith.constant 0 : index
    %143 = vector.load %arg3[%c48, %c0_54] : memref<64x64xf32, #tpu.memory_space<vmem>>, vector<8x64xf32>
    %cst_55 = arith.constant dense<0.000000e+00> : vector<16x64xf32>
    %144 = tpu.matmul %142, %143, %cst_55 {dimension_numbers = #tpu.dot_dimension_numbers<[1], [0], [0], [1], [0, 0, 1, 1], [], []>} : vector<16x8xf32>, vector<8x64xf32>, vector<16x64xf32> -> vector<16x64xf32>
    %145 = arith.addf %125, %144 : vector<16x64xf32>
    %146 = vector.extract_strided_slice %3 {offsets = [0, 56], sizes = [16, 8], strides = [1, 1]} : vector<16x192xf32> to vector<16x8xf32>
    %cst_56 = arith.constant 0.353553385 : f32
    %147 = vector.broadcast %cst_56 : f32 to vector<16x8xf32>
    %148 = arith.mulf %146, %147 : vector<16x8xf32>
    %149 = vector.extract_strided_slice %3 {offsets = [0, 120], sizes = [16, 8], strides = [1, 1]} : vector<16x192xf32> to vector<16x8xf32>
    %150 = vector.extract_strided_slice %3 {offsets = [0, 184], sizes = [16, 8], strides = [1, 1]} : vector<16x192xf32> to vector<16x8xf32>
    %cst_57 = arith.constant dense<0.000000e+00> : vector<16x16xf32>
    %151 = tpu.matmul %148, %149, %cst_57 {dimension_numbers = #tpu.dot_dimension_numbers<[1], [1], [0], [0], [0, 0, 1, 0], [], []>} : vector<16x8xf32>, vector<16x8xf32>, vector<16x16xf32> -> vector<16x16xf32>
    %cst_58 = arith.constant dense<0xFF800000> : vector<16xf32>
    %152 = vector.multi_reduction <maximumf>, %151, %cst_58 [1] : vector<16x16xf32> to vector<16xf32>
    %153 = vector.shape_cast %152 : vector<16xf32> to vector<16x1xf32>
    %154 = vector.broadcast %153 : vector<16x1xf32> to vector<16x16xf32>
    %155 = arith.subf %151, %154 : vector<16x16xf32>
    %156 = math.exp %155 : vector<16x16xf32>
    %cst_59 = arith.constant dense<0.000000e+00> : vector<16xf32>
    %157 = vector.multi_reduction <add>, %156, %cst_59 [1] : vector<16x16xf32> to vector<16xf32>
    %158 = vector.shape_cast %157 : vector<16xf32> to vector<16x1xf32>
    %159 = tpu.reciprocal %158 {approx = true} : vector<16x1xf32> -> vector<16x1xf32>
    %160 = vector.broadcast %159 : vector<16x1xf32> to vector<16x16xf32>
    %161 = arith.mulf %156, %160 : vector<16x16xf32>
    %cst_60 = arith.constant dense<0.000000e+00> : vector<16x8xf32>
    %162 = tpu.matmul %161, %150, %cst_60 {dimension_numbers = #tpu.dot_dimension_numbers<[1], [0], [0], [1], [0, 0, 1, 1], [], []>} : vector<16x16xf32>, vector<16x8xf32>, vector<16x8xf32> -> vector<16x8xf32>
    %c56 = arith.constant 56 : index
    %c0_61 = arith.constant 0 : index
    %163 = vector.load %arg3[%c56, %c0_61] : memref<64x64xf32, #tpu.memory_space<vmem>>, vector<8x64xf32>
    %cst_62 = arith.constant dense<0.000000e+00> : vector<16x64xf32>
    %164 = tpu.matmul %162, %163, %cst_62 {dimension_numbers = #tpu.dot_dimension_numbers<[1], [0], [0], [1], [0, 0, 1, 1], [], []>} : vector<16x8xf32>, vector<8x64xf32>, vector<16x64xf32> -> vector<16x64xf32>
    %165 = arith.addf %145, %164 : vector<16x64xf32>
    %c0_63 = arith.constant 0 : index
    %c0_64 = arith.constant 0 : index
    %c0_65 = arith.constant 0 : index
    %166 = vector.load %arg5[%c0_63, %c0_64, %c0_65] : memref<1x16x64xf32, #tpu.memory_space<vmem>>, vector<1x16x64xf32>
    %167 = vector.shape_cast %166 : vector<1x16x64xf32> to vector<16x64xf32>
    %168 = vector.shape_cast %165 : vector<16x64xf32> to vector<1x16x64xf32>
    tpu.vector_store %arg5[%c0_63, %c0_64, %c0_65], %168 {strides = array<i32>} : memref<1x16x64xf32, #tpu.memory_space<vmem>>, vector<1x16x64xf32>,
    return
  }
  func.func @transform_0(%arg0: i32) -> (i32, i32, i32) {
    %c0_i32 = arith.constant 0 : i32
    %c0_i32_0 = arith.constant 0 : i32
    %c0_i32_1 = arith.constant 0 : i32
    return %arg0, %c0_i32, %c0_i32_0 : i32, i32, i32
  }
  func.func @transform_1(%arg0: i32) -> (i32, i32) {
    %c0_i32 = arith.constant 0 : i32
    %c0_i32_0 = arith.constant 0 : i32
    %c0_i32_1 = arith.constant 0 : i32
    return %c0_i32, %c0_i32_0 : i32, i32
  }
  func.func @transform_2(%arg0: i32) -> (i32, i32) {
    %c0_i32 = arith.constant 0 : i32
    %c0_i32_0 = arith.constant 0 : i32
    %c0_i32_1 = arith.constant 0 : i32
    return %c0_i32, %c0_i32_0 : i32, i32
  }
  func.func @transform_3(%arg0: i32) -> (i32, i32) {
    %c0_i32 = arith.constant 0 : i32
    %c0_i32_0 = arith.constant 0 : i32
    %c0_i32_1 = arith.constant 0 : i32
    return %c0_i32, %c0_i32_0 : i32, i32
  }
  func.func @transform_4(%arg0: i32) -> (i32, i32, i32) {
    %c0_i32 = arith.constant 0 : i32
    %c0_i32_0 = arith.constant 0 : i32
    %c0_i32_1 = arith.constant 0 : i32
    return %arg0, %c0_i32, %c0_i32_0 : i32, i32, i32
  }
}

</mosaic_0001>

<bundles_post_ra>
// kernel: tpu_custom_call.1
= control target key start
LH: loop header
LB: loop body
LE: loop exit
PB: predicated region body
PF: predicated region fallthrough
CT: control target
= control target key end

     0   :  { %9 = vsyncpa [#allocation3], 0  ;;  %s2297_s0 = inlined_call_operand.hbm [shape: f32[2,16,64], index: 0, kind: input, shape index: {}]   ;;  %s2298_s1 = inlined_call_operand.hbm [shape: f32[64,192], index: 1, kind: input, shape index: {}]   ;;  %s2299_s2 = inlined_call_operand.hbm [shape: f32[64,64], index: 2, kind: input, shape index: {}]   ;;  %s2300_s3 = inlined_call_operand.vmem [shape: f32[1,64], index: 3, kind: input, shape index: {}]   ;;  %s2301_s4 = inlined_call_operand.hbm [shape: f32[2,16,64], index: 4, kind: output, shape index: {}]  }
   0x1   :  { %11 = vsyncpa [#allocation3 + $0x1], 0 }
   0x2   :  { %12 = vsyncpa [#allocation6], 0 }
   0x3   :  { %13 = vsyncpa [#allocation4], 0 }
   0x4   :  { %15 = vsyncpa [#allocation4 + $0x1], 0  ;;  %s1944_s15 = smov 0   ;;  %s1946_s16 = smov 0  }
   0x5   :  { %s1948_s17 = smov 0   ;;  %s1950_s18 = smov 0  }
   0x6 LB: > { %s1965_s19 = sadd.s32 4294967295, %s1895_s18   ;;  %s1460_s20 = sadd.s32 4294967294, %s1895_s18   ;;  %s1895_s18 = sphi %s1950_s18, %s2311_s18   ;;  %s1891_s17 = sphi %s1948_s17, %s2310_s17   ;;  %s1887_s16 = sphi %s1946_s16, %s2309_s16   ;;  %s1883_s15 = sphi %s1944_s15, %s2308_s15  }
   0x7   : > { %p41_p0 = scmp.ne.s32.totalorder %s1887_s16, %s1883_s15  ;;  %p42_p1 = scmp.eq.s32.totalorder %s1965_s19, 0 }
   0x8   : > { %p128_p2 = scmp.eq.s32.totalorder %s1965_s19, 1  ;;  %p134_p3 = scmp.eq.s32.totalorder %s1460_s20, 1 }
   0x9   : > { %p1974_p4 = por %p42_p1, %p41_p0  ;;  %p1461_p5 = scmp.ge.s32.totalorder %s1895_s18, 1 }
   0xa   : > { %p1979_p6 = por %p134_p3, %p41_p0  ;;  %p141_p7 = scmp.lt.s32.totalorder %s1895_s18, 3 }
   0xb   : > { %s152_s25 = sshll.u32 %s2298_s1, 4  ;;  %s1897_s27 = smov [#allocation5]   ;;  %s153_s25 = int_to_ptr.hbm [resolvable:$true] %s152_s25 }
   0xc   : > { %p1987_p8 = pnand %p1461_p5, %p141_p7  ;;  %s154_s28 = sshll.u32 %s1897_s27, 4  ;;  %s155_s28 = int_to_ptr.vmem [resolvable:$true] %s154_s28 }
   0xd   : > { %s166_s5 = sshll.u32 %s2299_s2, 4  ;;  %s1898_s6 = smov 256   ;;  %s167_s5 = int_to_ptr.hbm [resolvable:$true] %s166_s5 }
   0xe   : > { %p1560_p9 = pneg %p1987_p8  ;;  %s1899_s7 = smov 16  }
   0xf   : > { %s1900_s8 = smov [#allocation7]   ;;  %s1901_s10 = smov 128  }
  0x10   : > { %p1561_p10 = pnand %p1560_p9, %p42_p1  ;;  %s168_s9 = sshll.u32 %s1900_s8, 4  ;;  %s169_s9 = int_to_ptr.vmem [resolvable:$true] %s168_s9 }
  0x11   : > { %s1902_s11 = smov 8   ;;  %s2003_s12 = sadd.s32 1, %s1895_s18  }
  0x12   : > { %1563 = dma.hbm_to_vmem [thread:$0]  (!%p1561_p10), %s153_s25, 2048, %s155_s28, [#allocation6], %s1898_s6, %s1898_s6, %s1899_s7  }
  0x13   : > { %1566 = dma.hbm_to_vmem [thread:$0]  (!%p1561_p10), %s167_s5, 1024, %s169_s9, [#allocation6], %s1901_s10, %s1901_s10, %s1902_s11  }
  0x14   : > { %s25_s13 = ssub.s32 %s1895_s18, %s2003_s12  ;;  %s28_s14 = sadd.s32 1, %s1891_s17 }
  0x15   : > { %p26_p12 = scmp.eq.s32.totalorder %s25_s13, 0  ;;  %p35_p13 = scmp.ne.s32.totalorder %s1891_s17, %s1887_s16 }
  0x16   : > { %p36_p0 = scmp.eq.s32.totalorder %s1895_s18, 0  ;;  %p1577_p7 = scmp.lt.s32.totalorder %s1895_s18, 2 }
  0x17   : > { %s2012_s20 = scalar_select %p26_p12, %s1891_s17, %s28_s14  }
  0x18   : > { %p37_p3 = por %p36_p0, %p35_p13  ;;  %p2016_p5 = por %p128_p2, %p35_p13 }
  0x19   : > { %s185_s24 = sand.u32 1, %s1891_s17   ;;  %s1546_s27 = sshll.u32 %s1895_s18, 4 }
  0x1a   : > { %s1465_s25 = sshll.u32 %s185_s24, 4  ;;  %s194_s30 = scalar_lea.hbm %s2297_s0, %s1546_s27 }
  0x1b   : > { %s189_s5 = scalar_lea.vmem [#allocation2], %s1465_s25  ;;  %s195_s7 = sshll.u32 %s194_s30, 4  ;;  %s196_s7 = int_to_ptr.hbm [resolvable:$true] %s195_s7 }
  0x1c   : > { %s197_s6 = sshll.u32 %s189_s5, 4  ;;  %p2026_p9 = pnand %p1577_p7, %p37_p3  ;;  %s198_s6 = int_to_ptr.vmem [resolvable:$true] %s197_s6 }
  0x1d   : > { %s186_s9 = scalar_lea.sflag [#allocation3], %s185_s24  ;;  %s1795_s13 = sshra.s32 %s196_s7, 4  ;;  %s1796_s13 = int_to_ptr.hbm [resolvable:$true] %s1795_s13 }
  0x1e   : > { %s1797_s14 = scalar_lea.hbm %s1796_s13, 16  ;;  %p1799_p10 = pneg %p2026_p9 }
  0x1f   : > { %p1798_p2 = scmp.ne.s32.totalorder %s1796_s13, %s1797_s14  ;;  %s1802_s28 = scalar_lea.hbm %s2297_s0, 32 }
  0x20   : > { %p1803_p0 = scmp.lt.s32.totalorder %s1796_s13, %s2297_s0  ;;  %p1804_p3 = scmp.lt.s32.totalorder %s1802_s28, %s1797_s14 }
  0x21   : > { %p1800_p12 = pnand %p1799_p10, %p1798_p2 }
  0x22   : > { %p1805_p7 = por %p1804_p3, %p1803_p0 }
  0x23   : > { %p1801_p13 = pneg %p1800_p12 }
  0x25   : > { %p1806_p11 = pnand %p1805_p7, %p1801_p13 }
  0x27   : > { %1809 = shalt.err (!%p1806_p11)
}
  0x28   : > { %1570 = dma.hbm_to_vmem [thread:$0]  (!%p2026_p9), %s196_s7, 256, %s198_s6, %s186_s9, %s1901_s10, %s1901_s10, %s1902_s11  }
  0x29   : > { %209 = sbr.rel (%p1987_p8) target bundleno = 2602 (0xa2a), region = 36  ;;  %s2046_s24 = sand.u32 (!%p1987_p8), 1, %s1887_s16  }
  0x2a   : > { %s1469_s5 = sshll.u32 (!%p1987_p8), %s2046_s24, 4  ;;  %s212_s13 = scalar_lea.sflag (!%p1987_p8), [#allocation3], %s2046_s24 }
  0x2b   : > { %s215_s14 = scalar_lea.vmem (!%p1987_p8), [#allocation2], %s1469_s5 }
  0x2e   : > { %1870 = dma.done.wait (%p1974_p4), %s212_s13, 256  }
  0x2f   : > { %1872 = vsyncadd (%p1974_p4), %s212_s13, 4294967040 }
  0x30   : > { %1874 = dma.done.wait (%p42_p1), [#allocation6], 3072  }
  0x31   : > { %1876 = vsyncadd (%p42_p1), [#allocation6], 4294964224  ;;  %v267_v0 = vld [vmem:[#allocation5 + $0x70] sm:$0xff]  ;;  %v265_v1 = vld [vmem:[#allocation5 + $0x60] sm:$0xff]  ;;  %vm269_vm0 = vcmask 523264   ;;  %s1903_s21 = smov 120  }
  0x32   : > { %284 = vmatpush.msra.mxu0 %v267_v0  ;;  %v263_v2 = vld [vmem:[#allocation5 + $0x50] sm:$0xff]  ;;  %v261_v3 = vld [vmem:[#allocation5 + $0x40] sm:$0xff]  ;;  %v252_v9 = vld [vmem:[%s215_s14 + $0x8] sm:$0xff]  ;;  %s1904_s26 = smov 56   ;;  %s1905_s10 = smov 64   ;;  %vm331_vm1 = vcmask 64512  }
  0x33   : > { %v259_v4 = vld [vmem:[#allocation5 + $0x30] sm:$0xff]  ;;  %v257_v5 = vld [vmem:[#allocation5 + $0x20] sm:$0xff]  ;;  %v268_v16 = vld [vmem:[#allocation5 + $0x78] sm:$0xff]  ;;  %vm365_vm2 = vcmask 130048   ;;  %s1906_s11 = smov 48   ;;  %s1907_s6 = smov 40  }
  0x34   : > { %285 = vmatpush.msra.mxu0 %v265_v1  ;;  %v255_v6 = vld [vmem:[#allocation5 + $0x10] sm:$0xff]  ;;  %v253_v7 = vld [vmem:[#allocation5] sm:$0xff]  ;;  %v266_v17 = vld [vmem:[#allocation5 + $0x68] sm:$0xff]  ;;  %307 = vmatpush.msra.mxu1 %v268_v16  ;;  %s1908_s7 = smov 112   ;;  %s1909_s8 = smov 104  }
  0x35   : > { %v251_v8 = vld [vmem:[%s215_s14] sm:$0xff]  ;;  %v264_v18 = vld [vmem:[#allocation5 + $0x58] sm:$0xff]  ;;  %v262_v20 = vld [vmem:[#allocation5 + $0x48] sm:$0xff]  ;;  %s1910_s25 = smov 32   ;;  %s1911_s28 = smov 88  }
  0x36   : > { %286 = vmatpush.msra.mxu0 %v263_v2  ;;  %308 = vmatpush.msra.mxu1 %v266_v17  ;;  %v260_v21 = vld [vmem:[#allocation5 + $0x38] sm:$0xff]  ;;  %v258_v22 = vld [vmem:[#allocation5 + $0x28] sm:$0xff]  ;;  %v417_v59 = vld [vmem:[#allocation7] sm:$0xff]  ;;  %s1912_s29 = smov 24   ;;  %s1913_s30 = smov 96  }
  0x37   : > { %v256_v26 = vld [vmem:[#allocation5 + $0x18] sm:$0xff]  ;;  %v254_v27 = vld [vmem:[#allocation5 + $0x8] sm:$0xff]  ;;  %s1914_s13 = smov 8   ;;  %s1915_s14 = smov 16  }
  0x38   : > { %287 = vmatpush.msra.mxu0 %v261_v3  ;;  %309 = vmatpush.msra.mxu1 %v264_v18  ;;  %v550_v0 = vld [vmem:[#allocation7 + $0x8] sm:$0xff] }
  0x3a   : > { %288 = vmatpush.msra.mxu0 %v259_v4  ;;  %310 = vmatpush.msra.mxu1 %v262_v20 }
  0x3c   : > { %289 = vmatpush.msra.mxu0 %v257_v5  ;;  %311 = vmatpush.msra.mxu1 %v260_v21 }
  0x3e   : > { %290 = vmatpush.msra.mxu0 %v255_v6  ;;  %312 = vmatpush.msra.mxu1 %v258_v22 }
  0x40   : > { %291 = vmatpush.msra.mxu0 %v253_v7  ;;  %313 = vmatpush.msra.mxu1 %v256_v26 }
  0x41   : > { %1473 = vmatmul.msk.f32.vlgmr.msra.gmra.mxu0 %vm269_vm0, %v251_v8 }
  0x42   : > { %314 = vmatpush.msra.mxu1 %v254_v27 }
  0x43   : > { %1475 = vmatmul.msk.f32.vlgmr.msra.gmra.mxu1 %vm269_vm0, %v251_v8 }
  0x44   : > { %572 = vmatpush.msrb.mxu1 %v550_v0 }
  0x49   : > { %1474 = vmatmul.msk.f32.gmra.mxu0 %vm269_vm0, %v252_v9 }
  0x4b   : > { %1476 = vmatmul.msk.f32.gmra.mxu1 %vm269_vm0, %v252_v9 }
  0xbe   : > { %v2062_v10 = vpop.f32.mrf.mxu0 }
  0xbf   : > { %v2065_v11 = vmul.f32 0.35355338, %v2062_v10 }
  0xc0   : > { %v316_v36 = vpop.f32.mrf.mxu1 }
  0xc1   : > { %452 = vrot.lane.b32.xlu2 %v2065_v11, %s1903_s21 }
  0xc6   : > { %v2069_v12 = vpop.f32.mrf.mxu0 }
  0xc7   : > { %v2072_v13 = vmul.f32 0.35355338, %v2069_v12  ;;  %458 = vrot.lane.b32.xlu1 %v2069_v12, %s1904_s26  ;;  %329 = vrot.lane.b32.xlu0 %v2069_v12, %s1905_s10 }
  0xc8   : > { %v319_v37 = vpop.f32.mrf.mxu1 }
  0xc9   : > { %454 = vrot.lane.b32.xlu2 %v2072_v13, %s1903_s21  ;;  %408 = vmatpush.msra.mxu3 %v319_v37  ;;  %v2099_v56 = vpack.i.bf16 %v316_v36, %v319_v37 }
  0xcb   : > { %409 = vmatpush.msra.mxu3 %v316_v36 }
  0xcd   : > { %439 = vmatpush.msrb.mxu3 %v417_v59 }
  0xcf   : > { %456 = vrot.lane.b32.xlu1 %v2062_v10, %s1904_s26  ;;  %327 = vrot.lane.b32.xlu0 %v2062_v10, %s1905_s10  ;;  %s1917_s26 = smov 72   ;;  %s1547_s10 = sshll.u32 %s1965_s19, 4 }
  0xd0   : > { %s1353_s19 = scalar_lea.sflag [#allocation4], %s2046_s24 }
 0x11b   : > { %v453_v24 = vpop.permute.xlu2 %452 }
 0x123   : > { %v455_v25 = vpop.permute.xlu2 %454 }
 0x139   : > { %v330_v14 = vpop.permute.xlu0 %329  ;;  %v459_v15 = vpop.permute.xlu1 %458 }
 0x13a   : > { %1477 = vmatpush.xpose.msk.msra.mxu2 %vm331_vm1, %v330_v14 }
 0x141   : > { %v328_v19 = vpop.permute.xlu0 %327  ;;  %v457_v23 = vpop.permute.xlu1 %456 }
 0x142   : > { %1478 = vmatpush.xpose.msk.msra.mxu2 %vm331_vm1, %v328_v19 }
 0x145   : > { %1479 = vmatmul.msk.f32.vlgmr.msra.gmra.mxu2 %vm331_vm1, %v2065_v11 }
 0x146   : > { %1485 = vmatpush.xpose.msk.msrb.mxu2 %vm331_vm1, %v459_v15 }
 0x14a   : > { %1486 = vmatpush.xpose.msk.msrb.mxu2 %vm331_vm1, %v457_v23 }
 0x14d   : > { %1480 = vmatmul.msk.f32.gmra.mxu2 %vm331_vm1, %v2072_v13 }
 0x155   : > { %1487 = vmatmul.msk.f32.vlgmr.msrb.gmra.mxu2 %vm331_vm1, %v453_v24 }
 0x15d   : > { %1488 = vmatmul.msk.f32.gmra.mxu2 %vm331_vm1, %v455_v25 }
 0x1c8   : > { %v359_v28 = vpop.f32.mrf.mxu2 }
 0x1c9   : > { %v366_v29 = vsel %vm365_vm2, %v359_v28, -inf }
 0x1ca   : > { %367 = vmax.xlane.f32.xlu0 %v366_v29 }
 0x1d0   : > { %v362_v30 = vpop.f32.mrf.mxu2 }
 0x1d1   : > { %v369_v31 = vsel %vm365_vm2, %v362_v30, -inf }
 0x1d2   : > { %370 = vmax.xlane.f32.xlu1 %v369_v31 }
 0x1d8   : > { %v485_v32 = vpop.f32.mrf.mxu2 }
 0x1d9   : > { %v491_v33 = vsel %vm365_vm2, %v485_v32, -inf }
 0x1da   : > { %492 = vmax.xlane.f32.xlu2 %v491_v33 }
 0x1e0   : > { %v488_v34 = vpop.f32.mrf.mxu2 }
 0x1e1   : > { %v494_v35 = vsel %vm365_vm2, %v488_v34, -inf }
 0x1e2   : > { %495 = vmax.xlane.f32.xlu2 %v494_v35 }
 0x23d   : > { %v368_v38 = vpop.xlane.xlu0 %367 }
 0x23e   : > { %v372_v39 = vsub.f32 %v359_v28, %v368_v38  ;;  %v1670_v28 = vld [vmem:[%s2300_s3] ss:$0 sm:$0xff] }
 0x240   : > { %v374_v40 = vmul.f32 1.442695, %v372_v39 }
 0x242   : > { %1671 = vpow2.f32 %v374_v40 }
 0x245   : > { %v371_v41 = vpop.xlane.xlu1 %370 }
 0x246   : > { %v373_v42 = vsub.f32 %v362_v30, %v371_v41 }
 0x248   : > { %v1672_v43 = vpop.eup %1671  ;;  %v376_v44 = vmul.f32 1.442695, %v373_v42 }
 0x249   : > { %v378_v45 = vsel %vm365_vm2, %v1672_v43, 0.0 }
 0x24a   : > { %1673 = vpow2.f32 %v376_v44  ;;  %379 = vadd.xlane.f32.xlu0 %v378_v45 }
 0x24d   : > { %v493_v46 = vpop.xlane.xlu2 %492 }
 0x24e   : > { %v497_v47 = vsub.f32 %v485_v32, %v493_v46 }
 0x250   : > { %v1674_v48 = vpop.eup %1673  ;;  %v499_v49 = vmul.f32 1.442695, %v497_v47 }
 0x251   : > { %v381_v50 = vsel %vm365_vm2, %v1674_v48, 0.0 }
 0x252   : > { %1675 = vpow2.f32 %v499_v49  ;;  %382 = vadd.xlane.f32.xlu1 %v381_v50 }
 0x255   : > { %v496_v51 = vpop.xlane.xlu2 %495 }
 0x256   : > { %v498_v52 = vsub.f32 %v488_v34, %v496_v51  ;;  %v678_v51 = vld [vmem:[#allocation7 + $0x10] sm:$0xff] }
 0x258   : > { %v1676_v53 = vpop.eup %1675  ;;  %v501_v54 = vmul.f32 1.442695, %v498_v52 }
 0x259   : > { %v503_v55 = vsel %vm365_vm2, %v1676_v53, 0.0 }
 0x25a   : > { %1677 = vpow2.f32 %v501_v54  ;;  %504 = vadd.xlane.f32.xlu2 %v503_v55 }
 0x25e   : > { %1636 = vrot.lane.b32.xlu0 %v2099_v56, %s1903_s21  ;;  %s1916_s21 = smov 80  }
 0x260   : > { %v1678_v57 = vpop.eup %1677 }
 0x261   : > { %v506_v58 = vsel %vm365_vm2, %v1678_v57, 0.0 }
 0x262   : > { %507 = vadd.xlane.f32.xlu1 %v506_v58 }
 0x266   : > { %586 = vrot.lane.b32.xlu0 %v2062_v10, %s1906_s11 }
 0x26e   : > { %714 = vrot.lane.b32.xlu0 %v2062_v10, %s1907_s6 }
 0x272   : > { %588 = vrot.lane.b32.xlu2 %v2069_v12, %s1906_s11  ;;  %s250_s11 = scalar_lea.vmem [#allocation8], %s1469_s5 }
 0x273   : > { %s1365_s9 = sshll.u32 %s250_s11, 4  ;;  %s1366_s9 = int_to_ptr.vmem [resolvable:$true] %s1365_s9 }
 0x276   : > { %584 = vrot.lane.b32.xlu0 %v2072_v13, %s1908_s7 }
 0x27a   : > { %582 = vrot.lane.b32.xlu2 %v2065_v11, %s1908_s7 }
 0x27b   : > { %716 = vrot.lane.b32.xlu1 %v2069_v12, %s1907_s6 }
 0x282   : > { %712 = vrot.lane.b32.xlu2 %v2072_v13, %s1909_s8 }
 0x283   : > { %710 = vrot.lane.b32.xlu1 %v2065_v11, %s1909_s8 }
 0x2bd   : > { %v380_v60 = vpop.xlane.xlu0 %379 }
 0x2be   : > { %1679 = vrcp.f32 %v380_v60 }
 0x2c4   : > { %v1680_v61 = vpop.eup %1679 }
 0x2c5   : > { %v383_v62 = vpop.xlane.xlu1 %382  ;;  %v386_v63 = vmul.f32 %v1680_v61, %v1672_v43 }
 0x2c6   : > { %1681 = vrcp.f32 %v383_v62 }
 0x2c7   : > { %1481 = vmatmul.msk.f32.vlgmr.msra.gmra.mxu3 %vm365_vm2, %v386_v63 }
 0x2cc   : > { %v1682_v1 = vpop.eup %1681 }
 0x2cd   : > { %v505_v2 = vpop.xlane.xlu2 %504  ;;  %v387_v3 = vmul.f32 %v1682_v1, %v1674_v48 }
 0x2ce   : > { %1683 = vrcp.f32 %v505_v2 }
 0x2cf   : > { %1482 = vmatmul.msk.f32.gmra.mxu3 %vm365_vm2, %v387_v3 }
 0x2d0   : > { %v1637_v4 = vpop.permute.xlu0 %1636 }
 0x2d1   : > { %v1638_v5 = vunpack.i.l.bf16 %v1637_v4  ;;  %v1639_v6 = vunpack.i.h.bf16 %v1637_v4 }
 0x2d3   : > { %541 = vmatpush.msrb.mxu0 %v1638_v5 }
 0x2d4   : > { %v1684_v7 = vpop.eup %1683 }
 0x2d5   : > { %542 = vmatpush.msrb.mxu0 %v1639_v6  ;;  %v589_v8 = vpop.permute.xlu2 %588  ;;  %v508_v9 = vpop.xlane.xlu1 %507  ;;  %v511_v14 = vmul.f32 %v1684_v7, %v1676_v53 }
 0x2d6   : > { %1685 = vrcp.f32 %v508_v9  ;;  %1493 = vmatpush.xpose.msk.msra.mxu3 %vm331_vm1, %v589_v8 }
 0x2d7   : > { %1489 = vmatmul.msk.f32.vlgmr.msrb.gmra.mxu0 %vm365_vm2, %v511_v14 }
 0x2d8   : > { %v587_v15 = vpop.permute.xlu0 %586  ;;  %700 = vmatpush.msra.mxu0 %v678_v51 }
 0x2da   : > { %1494 = vmatpush.xpose.msk.msra.mxu3 %vm331_vm1, %v587_v15 }
 0x2dc   : > { %v1686_v16 = vpop.eup %1685 }
 0x2dd   : > { %v512_v17 = vmul.f32 %v1686_v16, %v1678_v57  ;;  %v583_v23 = vpop.permute.xlu2 %582 }
 0x2df   : > { %1490 = vmatmul.msk.f32.gmra.mxu0 %vm365_vm2, %v512_v17 }
 0x2e0   : > { %v715_v19 = vpop.permute.xlu0 %714 }
 0x2e5   : > { %v713_v27 = vpop.permute.xlu2 %712 }
 0x2e8   : > { %v585_v25 = vpop.permute.xlu0 %584 }
 0x2ed   : > { %v717_v18 = vpop.permute.xlu1 %716 }
 0x2ee   : > { %1501 = vmatpush.xpose.msk.msra.mxu1 %vm331_vm1, %v717_v18 }
 0x2f2   : > { %1502 = vmatpush.xpose.msk.msra.mxu1 %vm331_vm1, %v715_v19 }
 0x2f5   : > { %v711_v26 = vpop.permute.xlu1 %710 }
 0x34a   : > { %v411_v20 = vpop.f32.mrf.mxu3 }
 0x34b   : > { %1483 = vmatmul.msk.f32.vlgmr.msrb.gmra.mxu3 %vm331_vm1, %v411_v20  ;;  %v806_v20 = vld [vmem:[#allocation7 + $0x18] sm:$0xff] }
 0x352   : > { %v414_v21 = vpop.f32.mrf.mxu3 }
 0x353   : > { %1484 = vmatmul.msk.f32.gmra.mxu3 %vm331_vm1, %v414_v21 }
 0x354   : > { %v544_v22 = vpop.f32.mrf.mxu0 }
 0x355   : > { %1491 = vmatmul.msk.f32.vlgmr.msrb.gmra.mxu1 %vm331_vm1, %v544_v22 }
 0x35b   : > { %1495 = vmatmul.msk.f32.vlgmr.msra.gmra.mxu3 %vm331_vm1, %v583_v23 }
 0x35c   : > { %v547_v24 = vpop.f32.mrf.mxu0 }
 0x35d   : > { %1492 = vmatmul.msk.f32.gmra.mxu1 %vm331_vm1, %v547_v24 }
 0x363   : > { %1496 = vmatmul.msk.f32.gmra.mxu3 %vm331_vm1, %v585_v25 }
 0x365   : > { %1503 = vmatmul.msk.f32.vlgmr.msra.gmra.mxu1 %vm331_vm1, %v711_v26 }
 0x36d   : > { %1504 = vmatmul.msk.f32.gmra.mxu1 %vm331_vm1, %v713_v27 }
 0x3ce   : > { %v441_v29 = vpop.f32.mrf.mxu3 }
 0x3cf   : > { %v450_v30 = vadd.f32 %v1670_v28, %v441_v29 }
 0x3d2   : > { %v574_v31 = vpop.f32.mrf.mxu1 }
 0x3d3   : > { %v2135_v32 = vadd.f32 %v574_v31, %v450_v30 }
 0x3d6   : > { %v444_v33 = vpop.f32.mrf.mxu3 }
 0x3d7   : > { %v451_v34 = vadd.f32 %v1670_v28, %v444_v33 }
 0x3da   : > { %v577_v35 = vpop.f32.mrf.mxu1 }
 0x3db   : > { %v2137_v36 = vadd.f32 %v577_v35, %v451_v34 }
 0x3de   : > { %v615_v37 = vpop.f32.mrf.mxu3 }
 0x3df   : > { %v621_v38 = vsel %vm365_vm2, %v615_v37, -inf }
 0x3e0   : > { %622 = vmax.xlane.f32.xlu0 %v621_v38 }
 0x3e2   : > { %v743_v39 = vpop.f32.mrf.mxu1 }
 0x3e3   : > { %v749_v40 = vsel %vm365_vm2, %v743_v39, -inf }
 0x3e4   : > { %750 = vmax.xlane.f32.xlu1 %v749_v40 }
 0x3e6   : > { %v618_v41 = vpop.f32.mrf.mxu3 }
 0x3e7   : > { %v624_v43 = vsel %vm365_vm2, %v618_v41, -inf }
 0x3ea   : > { %v746_v42 = vpop.f32.mrf.mxu1 }
 0x3eb   : > { %v752_v44 = vsel %vm365_vm2, %v746_v42, -inf }
 0x3ec   : > { %625 = vmax.xlane.f32.xlu1 %v624_v43  ;;  %753 = vmax.xlane.f32.xlu2 %v752_v44 }
 0x405   : > { %1641 = vrot.lane.b32.xlu1 %v2099_v56, %s1909_s8  ;;  %s1364_s8 = scalar_lea.hbm %s2301_s4, %s1547_s10 }
 0x406   : > { %s1367_s27 = sshll.u32 %s1364_s8, 4  ;;  %s1368_s27 = int_to_ptr.hbm [resolvable:$true] %s1367_s27 }
 0x407   : > { %s1839_s5 = sshra.s32 %s1368_s27, 4  ;;  %s1840_s5 = int_to_ptr.hbm [resolvable:$true] %s1839_s5 }
 0x408   : > { %p1846_p11 = scmp.lt.s32.totalorder %s1840_s5, %s2301_s4 }
 0x40d   : > { %844 = vrot.lane.b32.xlu1 %v2069_v12, %s1910_s25 }
 0x415   : > { %966 = vrot.lane.b32.xlu1 %v2065_v11, %s1911_s28 }
 0x41d   : > { %968 = vrot.lane.b32.xlu1 %v2072_v13, %s1911_s28 }
 0x453   : > { %v623_v45 = vpop.xlane.xlu0 %622 }
 0x454   : > { %v627_v46 = vsub.f32 %v615_v37, %v623_v45 }
 0x456   : > { %v629_v47 = vmul.f32 1.442695, %v627_v46 }
 0x457   : > { %v751_v48 = vpop.xlane.xlu1 %750 }
 0x458   : > { %1687 = vpow2.f32 %v629_v47  ;;  %v755_v49 = vsub.f32 %v743_v39, %v751_v48 }
 0x45a   : > { %v757_v50 = vmul.f32 1.442695, %v755_v49 }
 0x45c   : > { %1689 = vpow2.f32 %v757_v50 }
 0x45e   : > { %v1688_v52 = vpop.eup %1687 }
 0x45f   : > { %v754_v53 = vpop.xlane.xlu2 %753  ;;  %v633_v54 = vsel %vm365_vm2, %v1688_v52, 0.0  ;;  %v626_v55 = vpop.xlane.xlu1 %625 }
 0x460   : > { %v756_v57 = vsub.f32 %v746_v42, %v754_v53  ;;  %634 = vadd.xlane.f32.xlu2 %v633_v54  ;;  %v628_v60 = vsub.f32 %v618_v41, %v626_v55 }
 0x462   : > { %v1690_v58 = vpop.eup %1689  ;;  %v759_v59 = vmul.f32 1.442695, %v756_v57  ;;  %v631_v62 = vmul.f32 1.442695, %v628_v60 }
 0x463   : > { %v761_v61 = vsel %vm365_vm2, %v1690_v58, 0.0 }
 0x464   : > { %762 = vadd.xlane.f32.xlu0 %v761_v61  ;;  %1691 = vpow2.f32 %v759_v59 }
 0x465   : > { %1693 = vpow2.f32 %v631_v62 }
 0x46a   : > { %v1692_v63 = vpop.eup %1691 }
 0x46b   : > { %v764_v0 = vsel %vm365_vm2, %v1692_v63, 0.0  ;;  %v1694_v1 = vpop.eup %1693 }
 0x46c   : > { %765 = vadd.xlane.f32.xlu0 %v764_v0  ;;  %v636_v2 = vsel %vm365_vm2, %v1694_v1, 0.0 }
 0x474   : > { %637 = vadd.xlane.f32.xlu0 %v636_v2 }
 0x477   : > { %v1642_v3 = vpop.permute.xlu1 %1641 }
 0x478   : > { %v1643_v4 = vunpack.i.l.bf16 %v1642_v3  ;;  %1646 = vrot.lane.b32.xlu2 %v2099_v56, %s1908_s7  ;;  %v1644_v5 = vunpack.i.h.bf16 %v1642_v3 }
 0x47a   : > { %797 = vmatpush.msrb.mxu3 %v1643_v4 }
 0x47c   : > { %798 = vmatpush.msrb.mxu3 %v1644_v5 }
 0x47f   : > { %v845_v6 = vpop.permute.xlu1 %844 }
 0x480   : > { %1509 = vmatpush.xpose.msk.msrb.mxu0 %vm331_vm1, %v845_v6  ;;  %970 = vrot.lane.b32.xlu2 %v2062_v10, %s1912_s29 }
 0x487   : > { %v967_v34 = vpop.permute.xlu1 %966 }
 0x488   : > { %842 = vrot.lane.b32.xlu2 %v2062_v10, %s1910_s25  ;;  %972 = vrot.lane.b32.xlu0 %v2069_v12, %s1912_s29  ;;  %s1841_s25 = scalar_lea.hbm %s1840_s5, 16 }
 0x489   : > { %p1842_p1 = scmp.ne.s32.totalorder %s1840_s5, %s1841_s25 }
 0x48b   : > { %p1843_p4 = pnand %p1842_p1, %p2016_p5 }
 0x48d   : > { %p1844_p8 = pneg %p1843_p4 }
 0x48f   : > { %v969_v37 = vpop.permute.xlu1 %968 }
 0x490   : > { %840 = vrot.lane.b32.xlu2 %v2072_v13, %s1913_s30  ;;  %838 = vrot.lane.b32.xlu0 %v2065_v11, %s1913_s30 }
 0x4d3   : > { %v635_v7 = vpop.xlane.xlu2 %634 }
 0x4d4   : > { %1695 = vrcp.f32 %v635_v7 }
 0x4d7   : > { %v763_v8 = vpop.xlane.xlu0 %762 }
 0x4d8   : > { %1697 = vrcp.f32 %v763_v8 }
 0x4da   : > { %v1696_v14 = vpop.eup %1695 }
 0x4db   : > { %v1647_v9 = vpop.permute.xlu2 %1646  ;;  %v641_v18 = vmul.f32 %v1696_v14, %v1688_v52 }
 0x4dc   : > { %v1648_v15 = vunpack.i.l.bf16 %v1647_v9  ;;  %v1649_v17 = vunpack.i.h.bf16 %v1647_v9 }
 0x4de   : > { %v1698_v16 = vpop.eup %1697  ;;  %669 = vmatpush.msra.mxu2 %v1648_v15 }
 0x4df   : > { %v769_v19 = vmul.f32 %v1698_v16, %v1690_v58  ;;  %v766_v21 = vpop.xlane.xlu0 %765 }
 0x4e0   : > { %670 = vmatpush.msra.mxu2 %v1649_v17  ;;  %1699 = vrcp.f32 %v766_v21 }
 0x4e1   : > { %1497 = vmatmul.msk.f32.vlgmr.msra.gmra.mxu2 %vm365_vm2, %v641_v18  ;;  %1505 = vmatmul.msk.f32.vlgmr.msrb.gmra.mxu3 %vm365_vm2, %v769_v19  ;;  %v1062_v18 = vld [vmem:[#allocation7 + $0x28] sm:$0xff]  ;;  %v934_v19 = vld [vmem:[#allocation7 + $0x20] sm:$0xff] }
 0x4e2   : > { %828 = vmatpush.msrb.mxu2 %v806_v20  ;;  %956 = vmatpush.msra.mxu3 %v934_v19 }
 0x4e3   : > { %v971_v22 = vpop.permute.xlu2 %970 }
 0x4e6   : > { %v1700_v23 = vpop.eup %1699 }
 0x4e7   : > { %v638_v24 = vpop.xlane.xlu0 %637  ;;  %v770_v25 = vmul.f32 %v1700_v23, %v1692_v63 }
 0x4e8   : > { %1701 = vrcp.f32 %v638_v24 }
 0x4e9   : > { %1506 = vmatmul.msk.f32.gmra.mxu3 %vm365_vm2, %v770_v25 }
 0x4eb   : > { %v843_v26 = vpop.permute.xlu2 %842 }
 0x4ec   : > { %1510 = vmatpush.xpose.msk.msrb.mxu0 %vm331_vm1, %v843_v26 }
 0x4ee   : > { %v1702_v27 = vpop.eup %1701 }
 0x4ef   : > { %v642_v28 = vmul.f32 %v1702_v27, %v1694_v1 }
 0x4f1   : > { %1498 = vmatmul.msk.f32.gmra.mxu2 %vm365_vm2, %v642_v28 }
 0x4f3   : > { %v841_v39 = vpop.permute.xlu2 %840 }
 0x4fa   : > { %v973_v29 = vpop.permute.xlu0 %972 }
 0x4fb   : > { %1517 = vmatpush.xpose.msk.msra.mxu2 %vm331_vm1, %v973_v29 }
 0x4ff   : > { %1518 = vmatpush.xpose.msk.msra.mxu2 %vm331_vm1, %v971_v22 }
 0x502   : > { %v839_v38 = vpop.permute.xlu0 %838 }
 0x564   : > { %v672_v30 = vpop.f32.mrf.mxu2  ;;  %v800_v31 = vpop.f32.mrf.mxu3 }
 0x565   : > { %1499 = vmatmul.msk.f32.vlgmr.msra.gmra.mxu0 %vm331_vm1, %v672_v30  ;;  %1507 = vmatmul.msk.f32.vlgmr.msrb.gmra.mxu2 %vm331_vm1, %v800_v31 }
 0x56c   : > { %v803_v33 = vpop.f32.mrf.mxu3 }
 0x56d   : > { %1508 = vmatmul.msk.f32.gmra.mxu2 %vm331_vm1, %v803_v33 }
 0x574   : > { %v675_v35 = vpop.f32.mrf.mxu2 }
 0x575   : > { %1500 = vmatmul.msk.f32.gmra.mxu0 %vm331_vm1, %v675_v35  ;;  %1519 = vmatmul.msk.f32.vlgmr.msra.gmra.mxu2 %vm331_vm1, %v967_v34 }
 0x57d   : > { %1511 = vmatmul.msk.f32.vlgmr.msrb.gmra.mxu0 %vm331_vm1, %v839_v38  ;;  %1520 = vmatmul.msk.f32.gmra.mxu2 %vm331_vm1, %v969_v37 }
 0x585   : > { %1512 = vmatmul.msk.f32.gmra.mxu0 %vm331_vm1, %v841_v39 }
 0x5e2   : > { %v702_v40 = vpop.f32.mrf.mxu0 }
 0x5e3   : > { %v708_v41 = vadd.f32 %v702_v40, %v2135_v32 }
 0x5e8   : > { %v830_v42 = vpop.f32.mrf.mxu2 }
 0x5e9   : > { %v2182_v43 = vadd.f32 %v830_v42, %v708_v41 }
 0x5f0   : > { %v833_v44 = vpop.f32.mrf.mxu2 }
 0x5f2   : > { %v705_v45 = vpop.f32.mrf.mxu0 }
 0x5f3   : > { %v709_v46 = vadd.f32 %v705_v45, %v2137_v36 }
 0x5f5   : > { %v2185_v47 = vadd.f32 %v833_v44, %v709_v46 }
 0x5f8   : > { %v999_v48 = vpop.f32.mrf.mxu2 }
 0x5f9   : > { %v1005_v49 = vsel %vm365_vm2, %v999_v48, -inf }
 0x5fa   : > { %1006 = vmax.xlane.f32.xlu1 %v1005_v49  ;;  %v871_v50 = vpop.f32.mrf.mxu0 }
 0x5fb   : > { %v877_v51 = vsel %vm365_vm2, %v871_v50, -inf }
 0x5fc   : > { %878 = vmax.xlane.f32.xlu0 %v877_v51 }
 0x600   : > { %v1002_v52 = vpop.f32.mrf.mxu2 }
 0x601   : > { %v1008_v32 = vsel %vm365_vm2, %v1002_v52, -inf }
 0x602   : > { %v874_v53 = vpop.f32.mrf.mxu0 }
 0x603   : > { %v880_v54 = vsel %vm365_vm2, %v874_v53, -inf }
 0x604   : > { %1009 = vmax.xlane.f32.xlu0 %v1008_v32  ;;  %881 = vmax.xlane.f32.xlu2 %v880_v54 }
 0x618   : > { %1651 = vrot.lane.b32.xlu0 %v2099_v56, %s1913_s30  ;;  %s1845_s30 = scalar_lea.hbm %s2301_s4, 32 }
 0x619   : > { %p1847_p9 = scmp.lt.s32.totalorder %s1845_s30, %s1841_s25 }
 0x61b   : > { %p1848_p2 = por %p1847_p9, %p1846_p11 }
 0x61d   : > { %p1849_p10 = pnand %p1848_p2, %p1844_p8 }
 0x620   : > { %1228 = vrot.lane.b32.xlu0 %v2069_v12, %s1914_s13 }
 0x628   : > { %1098 = vrot.lane.b32.xlu0 %v2062_v10, %s1915_s14 }
 0x630   : > { %1094 = vrot.lane.b32.xlu0 %v2065_v11, %s1916_s21 }
 0x638   : > { %1224 = vrot.lane.b32.xlu0 %v2072_v13, %s1917_s26 }
 0x66d   : > { %v1007_v36 = vpop.xlane.xlu1 %1006 }
 0x66e   : > { %v1011_v55 = vsub.f32 %v999_v48, %v1007_v36 }
 0x66f   : > { %v879_v57 = vpop.xlane.xlu0 %878 }
 0x670   : > { %v1013_v58 = vmul.f32 1.442695, %v1011_v55  ;;  %v883_v59 = vsub.f32 %v871_v50, %v879_v57 }
 0x672   : > { %1703 = vpow2.f32 %v1013_v58  ;;  %v885_v60 = vmul.f32 1.442695, %v883_v59 }
 0x674   : > { %1705 = vpow2.f32 %v885_v60 }
 0x677   : > { %v882_v61 = vpop.xlane.xlu2 %881  ;;  %v1010_v63 = vpop.xlane.xlu0 %1009 }
 0x678   : > { %v1704_v62 = vpop.eup %1703  ;;  %v884_v0 = vsub.f32 %v874_v53, %v882_v61  ;;  %v1012_v4 = vsub.f32 %v1002_v52, %v1010_v63 }
 0x679   : > { %v1017_v1 = vsel %vm365_vm2, %v1704_v62, 0.0 }
 0x67a   : > { %v1706_v2 = vpop.eup %1705  ;;  %v887_v3 = vmul.f32 1.442695, %v884_v0  ;;  %1018 = vadd.xlane.f32.xlu2 %v1017_v1  ;;  %v1015_v6 = vmul.f32 1.442695, %v1012_v4 }
 0x67b   : > { %v889_v5 = vsel %vm365_vm2, %v1706_v2, 0.0 }
 0x67c   : > { %890 = vadd.xlane.f32.xlu1 %v889_v5  ;;  %1707 = vpow2.f32 %v887_v3 }
 0x67d   : > { %1709 = vpow2.f32 %v1015_v6 }
 0x682   : > { %v1708_v7 = vpop.eup %1707 }
 0x683   : > { %v892_v8 = vsel %vm365_vm2, %v1708_v7, 0.0  ;;  %v1710_v9 = vpop.eup %1709 }
 0x684   : > { %893 = vadd.xlane.f32.xlu1 %v892_v8  ;;  %v1020_v16 = vsel %vm365_vm2, %v1710_v9, 0.0 }
 0x68a   : > { %v1652_v14 = vpop.permute.xlu0 %1651 }
 0x68b   : > { %v1653_v15 = vunpack.i.l.bf16 %v1652_v14  ;;  %v1654_v17 = vunpack.i.h.bf16 %v1652_v14 }
 0x68c   : > { %1021 = vadd.xlane.f32.xlu1 %v1020_v16 }
 0x68d   : > { %925 = vmatpush.msrb.mxu1 %v1653_v15 }
 0x68f   : > { %926 = vmatpush.msrb.mxu1 %v1654_v17 }
 0x691   : > { %1084 = vmatpush.msra.mxu1 %v1062_v18 }
 0x692   : > { %1656 = vrot.lane.b32.xlu2 %v2099_v56, %s1911_s28 }
 0x69a   : > { %1226 = vrot.lane.b32.xlu2 %v2062_v10, %s1914_s13 }
 0x6a2   : > { %1222 = vrot.lane.b32.xlu2 %v2065_v11, %s1917_s26 }
 0x6a5   : > { %1100 = vrot.lane.b32.xlu1 %v2069_v12, %s1915_s14  ;;  %v1229_v12 = vpop.permute.xlu0 %1228 }
 0x6ad   : > { %1096 = vrot.lane.b32.xlu1 %v2072_v13, %s1916_s21  ;;  %v1099_v35 = vpop.permute.xlu0 %1098 }
 0x6b5   : > { %v1095_v40 = vpop.permute.xlu0 %1094 }
 0x6bd   : > { %v1225_v45 = vpop.permute.xlu0 %1224 }
 0x6ed   : > { %v1019_v20 = vpop.xlane.xlu2 %1018 }
 0x6ee   : > { %1711 = vrcp.f32 %v1019_v20 }
 0x6ef   : > { %v891_v21 = vpop.xlane.xlu1 %890 }
 0x6f0   : > { %1713 = vrcp.f32 %v891_v21 }
 0x6f4   : > { %v1712_v22 = vpop.eup %1711 }
 0x6f5   : > { %v1657_v23 = vpop.permute.xlu2 %1656  ;;  %v1025_v27 = vmul.f32 %v1712_v22, %v1704_v62 }
 0x6f6   : > { %v1714_v10 = vpop.eup %1713  ;;  %v1658_v24 = vunpack.i.l.bf16 %v1657_v23  ;;  %v1659_v11 = vunpack.i.h.bf16 %v1657_v23 }
 0x6f7   : > { %v897_v25 = vmul.f32 %v1714_v10, %v1706_v2  ;;  %v894_v26 = vpop.xlane.xlu1 %893 }
 0x6f8   : > { %1053 = vmatpush.msra.mxu0 %v1658_v24  ;;  %1715 = vrcp.f32 %v894_v26 }
 0x6f9   : > { %1513 = vmatmul.msk.f32.vlgmr.msrb.gmra.mxu1 %vm365_vm2, %v897_v25 }
 0x6fa   : > { %1533 = vmatpush.xpose.msk.msrb.mxu1 %vm331_vm1, %v1229_v12  ;;  %1054 = vmatpush.msra.mxu0 %v1659_v11 }
 0x6fb   : > { %1521 = vmatmul.msk.f32.vlgmr.msra.gmra.mxu0 %vm365_vm2, %v1025_v27 }
 0x6fd   : > { %v1227_v13 = vpop.permute.xlu2 %1226 }
 0x6fe   : > { %1534 = vmatpush.xpose.msk.msrb.mxu1 %vm331_vm1, %v1227_v13  ;;  %v1716_v28 = vpop.eup %1715 }
 0x6ff   : > { %v1022_v29 = vpop.xlane.xlu1 %1021  ;;  %v898_v30 = vmul.f32 %v1716_v28, %v1708_v7 }
 0x700   : > { %1717 = vrcp.f32 %v1022_v29 }
 0x701   : > { %1514 = vmatmul.msk.f32.gmra.mxu1 %vm365_vm2, %v898_v30 }
 0x705   : > { %v1223_v42 = vpop.permute.xlu2 %1222 }
 0x706   : > { %v1718_v31 = vpop.eup %1717 }
 0x707   : > { %v1026_v33 = vmul.f32 %v1718_v31, %v1710_v9 }
 0x709   : > { %1522 = vmatmul.msk.f32.gmra.mxu0 %vm365_vm2, %v1026_v33 }
 0x717   : > { %v1101_v34 = vpop.permute.xlu1 %1100 }
 0x718   : > { %1525 = vmatpush.xpose.msk.msrb.mxu3 %vm331_vm1, %v1101_v34  ;;  %v1318_v34 = vld [vmem:[#allocation7 + $0x38] sm:$0xff] }
 0x71c   : > { %1526 = vmatpush.xpose.msk.msrb.mxu3 %vm331_vm1, %v1099_v35  ;;  %v1190_v35 = vld [vmem:[#allocation7 + $0x30] sm:$0xff] }
 0x71d   : > { %1212 = vmatpush.msrb.mxu0 %v1190_v35 }
 0x71f   : > { %v1097_v44 = vpop.permute.xlu1 %1096 }
 0x776   : > { %v928_v37 = vpop.f32.mrf.mxu1 }
 0x777   : > { %1515 = vmatmul.msk.f32.vlgmr.msra.gmra.mxu3 %vm331_vm1, %v928_v37 }
 0x778   : > { %v1056_v38 = vpop.f32.mrf.mxu0 }
 0x779   : > { %1523 = vmatmul.msk.f32.vlgmr.msra.gmra.mxu1 %vm331_vm1, %v1056_v38 }
 0x77e   : > { %v931_v39 = vpop.f32.mrf.mxu1 }
 0x77f   : > { %1516 = vmatmul.msk.f32.gmra.mxu3 %vm331_vm1, %v931_v39 }
 0x786   : > { %v1059_v41 = vpop.f32.mrf.mxu0 }
 0x787   : > { %1524 = vmatmul.msk.f32.gmra.mxu1 %vm331_vm1, %v1059_v41  ;;  %1527 = vmatmul.msk.f32.vlgmr.msrb.gmra.mxu3 %vm331_vm1, %v1095_v40 }
 0x78f   : > { %1528 = vmatmul.msk.f32.gmra.mxu3 %vm331_vm1, %v1097_v44  ;;  %1535 = vmatmul.msk.f32.vlgmr.msrb.gmra.mxu1 %vm331_vm1, %v1223_v42 }
 0x797   : > { %1536 = vmatmul.msk.f32.gmra.mxu1 %vm331_vm1, %v1225_v45 }
 0x7f6   : > { %v1086_v49 = vpop.f32.mrf.mxu1 }
 0x7fa   : > { %v958_v46 = vpop.f32.mrf.mxu3 }
 0x7fb   : > { %v964_v48 = vadd.f32 %v958_v46, %v2182_v43 }
 0x7fd   : > { %v2232_v50 = vadd.f32 %v1086_v49, %v964_v48 }
 0x802   : > { %v961_v51 = vpop.f32.mrf.mxu3 }
 0x803   : > { %v965_v52 = vadd.f32 %v961_v51, %v2185_v47 }
 0x804   : > { %v1089_v53 = vpop.f32.mrf.mxu1 }
 0x805   : > { %v2235_v32 = vadd.f32 %v1089_v53, %v965_v52 }
 0x80a   : > { %v1127_v54 = vpop.f32.mrf.mxu3 }
 0x80b   : > { %v1133_v36 = vsel %vm365_vm2, %v1127_v54, -inf }
 0x80c   : > { %1134 = vmax.xlane.f32.xlu1 %v1133_v36  ;;  %v1255_v55 = vpop.f32.mrf.mxu1 }
 0x80d   : > { %v1261_v57 = vsel %vm365_vm2, %v1255_v55, -inf }
 0x80e   : > { %1262 = vmax.xlane.f32.xlu2 %v1261_v57 }
 0x812   : > { %v1130_v58 = vpop.f32.mrf.mxu3 }
 0x813   : > { %v1136_v43 = vsel %vm365_vm2, %v1130_v58, -inf }
 0x814   : > { %v1258_v59 = vpop.f32.mrf.mxu1 }
 0x815   : > { %v1264_v60 = vsel %vm365_vm2, %v1258_v59, -inf }
 0x816   : > { %1137 = vmax.xlane.f32.xlu2 %v1136_v43  ;;  %1265 = vmax.xlane.f32.xlu0 %v1264_v60 }
 0x82e   : > { %1661 = vrot.lane.b32.xlu2 %v2099_v56, %s1917_s26 }
 0x87f   : > { %v1135_v47 = vpop.xlane.xlu1 %1134 }
 0x880   : > { %v1139_v61 = vsub.f32 %v1127_v54, %v1135_v47 }
 0x881   : > { %v1263_v62 = vpop.xlane.xlu2 %1262 }
 0x882   : > { %v1141_v63 = vmul.f32 1.442695, %v1139_v61  ;;  %v1267_v0 = vsub.f32 %v1255_v55, %v1263_v62 }
 0x884   : > { %1719 = vpow2.f32 %v1141_v63  ;;  %v1269_v1 = vmul.f32 1.442695, %v1267_v0 }
 0x886   : > { %1721 = vpow2.f32 %v1269_v1 }
 0x889   : > { %v1138_v2 = vpop.xlane.xlu2 %1137  ;;  %v1266_v3 = vpop.xlane.xlu0 %1265 }
 0x88a   : > { %v1720_v4 = vpop.eup %1719  ;;  %v1268_v5 = vsub.f32 %v1258_v59, %v1266_v3  ;;  %v1140_v9 = vsub.f32 %v1130_v58, %v1138_v2 }
 0x88b   : > { %v1145_v6 = vsel %vm365_vm2, %v1720_v4, 0.0 }
 0x88c   : > { %v1722_v7 = vpop.eup %1721  ;;  %v1271_v8 = vmul.f32 1.442695, %v1268_v5  ;;  %1146 = vadd.xlane.f32.xlu0 %v1145_v6  ;;  %v1143_v15 = vmul.f32 1.442695, %v1140_v9 }
 0x88d   : > { %v1273_v14 = vsel %vm365_vm2, %v1722_v7, 0.0 }
 0x88e   : > { %1274 = vadd.xlane.f32.xlu1 %v1273_v14  ;;  %1723 = vpow2.f32 %v1271_v8 }
 0x88f   : > { %1725 = vpow2.f32 %v1143_v15 }
 0x891   : > { %v1662_v16 = vpop.permute.xlu2 %1661 }
 0x892   : > { %v1663_v17 = vunpack.i.l.bf16 %v1662_v16  ;;  %v1664_v18 = vunpack.i.h.bf16 %v1662_v16 }
 0x894   : > { %1309 = vmatpush.msra.mxu3 %v1663_v17  ;;  %v1724_v19 = vpop.eup %1723 }
 0x895   : > { %v1276_v20 = vsel %vm365_vm2, %v1724_v19, 0.0  ;;  %v1726_v21 = vpop.eup %1725 }
 0x896   : > { %1310 = vmatpush.msra.mxu3 %v1664_v18  ;;  %1277 = vadd.xlane.f32.xlu1 %v1276_v20  ;;  %v1148_v22 = vsel %vm365_vm2, %v1726_v21, 0.0 }
 0x89e   : > { %1149 = vadd.xlane.f32.xlu1 %v1148_v22 }
 0x8a0   : > { %1666 = vrot.lane.b32.xlu0 %v2099_v56, %s1916_s21 }
 0x8ff   : > { %v1147_v25 = vpop.xlane.xlu0 %1146 }
 0x901   : > { %v1275_v23 = vpop.xlane.xlu1 %1274 }
 0x902   : > { %1727 = vrcp.f32 %v1275_v23 }
 0x908   : > { %v1728_v10 = vpop.eup %1727 }
 0x909   : > { %v1281_v24 = vmul.f32 %v1728_v10, %v1722_v7  ;;  %v1278_v11 = vpop.xlane.xlu1 %1277 }
 0x90a   : > { %1729 = vrcp.f32 %v1278_v11 }
 0x90b   : > { %1537 = vmatmul.msk.f32.vlgmr.msra.gmra.mxu3 %vm365_vm2, %v1281_v24  ;;  %1731 = vrcp.f32 %v1147_v25 }
 0x910   : > { %v1730_v26 = vpop.eup %1729 }
 0x911   : > { %v1150_v12 = vpop.xlane.xlu1 %1149  ;;  %v1282_v13 = vmul.f32 %v1730_v26, %v1724_v19  ;;  %v1732_v28 = vpop.eup %1731 }
 0x912   : > { %v1667_v27 = vpop.permute.xlu0 %1666  ;;  %1733 = vrcp.f32 %v1150_v12  ;;  %v1153_v30 = vmul.f32 %v1732_v28, %v1720_v4 }
 0x913   : > { %v1668_v29 = vunpack.i.l.bf16 %v1667_v27  ;;  %1538 = vmatmul.msk.f32.gmra.mxu3 %vm365_vm2, %v1282_v13  ;;  %v1669_v56 = vunpack.i.h.bf16 %v1667_v27 }
 0x915   : > { %1181 = vmatpush.msrb.mxu2 %v1668_v29 }
 0x917   : > { %1182 = vmatpush.msrb.mxu2 %v1669_v56 }
 0x918   : > { %1529 = vmatmul.msk.f32.vlgmr.msrb.gmra.mxu2 %vm365_vm2, %v1153_v30  ;;  %v1734_v31 = vpop.eup %1733 }
 0x919   : > { %v1154_v33 = vmul.f32 %v1734_v31, %v1726_v21  ;;  %1340 = vmatpush.msra.mxu2 %v1318_v34 }
 0x920   : > { %1530 = vmatmul.msk.f32.gmra.mxu2 %vm365_vm2, %v1154_v33 }
 0x98e   : > { %v1312_v37 = vpop.f32.mrf.mxu3 }
 0x98f   : > { %1539 = vmatmul.msk.f32.vlgmr.msra.gmra.mxu2 %vm331_vm1, %v1312_v37 }
 0x996   : > { %v1315_v38 = vpop.f32.mrf.mxu3 }
 0x997   : > { %1540 = vmatmul.msk.f32.gmra.mxu2 %vm331_vm1, %v1315_v38 }
 0x99b   : > { %v1184_v39 = vpop.f32.mrf.mxu2 }
 0x99c   : > { %1531 = vmatmul.msk.f32.vlgmr.msrb.gmra.mxu0 %vm331_vm1, %v1184_v39 }
 0x9a3   : > { %v1187_v40 = vpop.f32.mrf.mxu2 }
 0x9a4   : > { %1532 = vmatmul.msk.f32.gmra.mxu0 %vm331_vm1, %v1187_v40 }
 0xa12   : > { %v1342_v41 = vpop.f32.mrf.mxu2 }
 0xa19   : > { %v1214_v42 = vpop.f32.mrf.mxu0 }
 0xa1a   : > { %v1220_v44 = vadd.f32 %v1214_v42, %v2232_v50  ;;  %v1345_v49 = vpop.f32.mrf.mxu2 }
 0xa1c   : > { %v1348_v45 = vadd.f32 %v1342_v41, %v1220_v44 }
 0xa1e   : > { %1350 = vst.msk [vmem:[%s250_s11] sm:$0xff] %vm269_vm0, %v1348_v45 }
 0xa21   : > { %v1217_v46 = vpop.f32.mrf.mxu0 }
 0xa22   : > { %v1221_v48 = vadd.f32 %v1217_v46, %v2235_v32 }
 0xa24   : > { %v1349_v51 = vadd.f32 %v1345_v49, %v1221_v48 }
 0xa26   : > { %1351 = vst.msk [vmem:[%s250_s11 + $0x8] sm:$0xff] %vm269_vm0, %v1349_v51 }
 0xa27   : > { %1852 = shalt.err (!%p1849_p10)
}
 0xa28   : > { %s1918_s24 = smov 128  }
 0xa29   : > { %1558 = dma.vmem_to_hbm [thread:$0]  (%p2016_p5), %s1366_s9, 256, %s1368_s27, %s1353_s19, %s1918_s24, %s1918_s24, %s1914_s13  }
 0xa2a PF: > { %s1382_s26 = sand.u32 1, %s1883_s15   ;;  %p2307_p12 = scmp.ge.s32.totalorder %s1895_s18, 2 }
 0xa2b   : > { %s1383_s10 = scalar_lea.sflag [#allocation4], %s1382_s26 }
 0xa2c   : > { %p1572_p13 = pnand %p2307_p12, %p1979_p6 }
 0xa2e   : > { %p1573_p0 = pneg %p1572_p13 }
 0xa30   : > { %1878 = dma.done.wait (%p1573_p0), %s1383_s10, 256  }
 0xa31   : > { %1880 = vsyncadd (%p1573_p0), %s1383_s10, 4294967040  ;;  %p18_p3 = scmp.ge.s32.totalorder %s2003_s12, 4   ;;  %s2308_s15 = smov %s1887_s16 }
 0xa32   : > { %s2309_s16 = smov %s1891_s17  ;;  %s2310_s17 = smov %s2012_s20 }
 0xa33   : > { %s2311_s18 = smov %s2003_s12  ;;  %20 = sbr.rel (!%p18_p3) target bundleno = 6 (0x6), region = 89 }
 0xa38   :  { %1389 = vsyncpa [#allocation3], 1 }
 0xa39   :  { %1391 = vsyncpa [#allocation3 + $0x1], 1 }
 0xa3a   :  { %1392 = vsyncpa [#allocation6], 1 }
 0xa3b   :  { %1393 = vsyncpa [#allocation4], 1 }
 0xa3c   :  { %1395 = vsyncpa [#allocation4 + $0x1], 1 }

</bundles_post_ra>
